<compile_context>
chip_gen: v6e
topology: v6e:2x2x1
jax: 0.10.0
libtpu: 0.0.40
codegen_flags: <defaults>
</compile_context>

<pallas_src>
import functools

import jax
import jax.numpy as jnp
from jax.experimental import pallas as pl
from jax.experimental.pallas import tpu as pltpu


def ffn_kernel(x_ref, w1_ref, b1_ref, w2_ref, b2_ref, gamma_ref, beta_ref,
               out_ref, acc_ref, *, eps, inv_d):
    """Grid = (token row-tiles, d_hid chunks).  One (tm, d_in) row tile per i,
    accumulating the second projection over hidden chunks k in f32 scratch."""
    k = pl.program_id(1)

    @pl.when(k == 0)
    def _init():
        acc_ref[...] = jnp.zeros_like(acc_ref)

    x_f32 = x_ref[...]                                   # (tm, d_in) f32 (residual)
    x_bf = x_f32.astype(jnp.bfloat16)                    # bf16 MXU operand

    # h_k = relu(x @ W1[:, chunk] + b1[chunk]); bf16 operands, f32 accumulation.
    h = jnp.dot(x_bf, w1_ref[...], preferred_element_type=jnp.float32) + b1_ref[...]
    h = jnp.maximum(h, 0.0)                              # F.relu (f32)

    # Partial second projection, accumulated in f32 across hidden chunks.
    acc_ref[...] += jnp.dot(h.astype(jnp.bfloat16), w2_ref[...],
                            preferred_element_type=jnp.float32)

    @pl.when(k == pl.num_programs(1) - 1)
    def _finalize():
        # Dropout(p=0.0) is the identity -> omitted.  Residual add in f32.
        y = acc_ref[...] + b2_ref[...] + x_f32
        # Post-LayerNorm (prenorm=False), one-pass stats in f32, rsqrt on the EUP.
        s1 = jnp.sum(y, axis=-1, keepdims=True)
        s2 = jnp.sum(y * y, axis=-1, keepdims=True)
        mean = s1 * inv_d
        var = jnp.maximum(s2 * inv_d - mean * mean, 0.0)   # guard mild cancellation
        normed = (y - mean) * jax.lax.rsqrt(var + eps)
        out_ref[...] = (normed * gamma_ref[...] + beta_ref[...]).astype(out_ref.dtype)


def _pick_row_tile(m):
    """Largest tile (multiple of 8, preferring MXU-friendly 256-multiples) that divides m
    while leaving >=2 grid steps on the parallel axis (v7x has 2 TensorCores)."""
    for cand in (1024, 512, 256, 128, 64, 32, 16, 8):
        if m % cand == 0 and m // cand >= 2:
            return cand
    return m  # tiny M: full-extent block (always legal)


def _pick_hidden_chunk(d_hid):
    """Hidden-dim chunk: multiple of 256 (MXU-aligned) that divides d_hid, else full d_hid.
    Bounds VMEM for the streamed w1/w2 blocks and the (tm, chunk) intermediate."""
    for cand in (2048, 1024, 512, 256):
        if d_hid % cand == 0:
            return cand
    return d_hid


def positionwise_feed_forward(x, params, *, eps=1e-6):
    """x: (B, L, d_in) float32. Returns (B, L, d_in)."""
    B, L, d_in = x.shape
    d_hid = params["w1"].shape[1]
    M = B * L
    x2d = x.reshape(M, d_in)            # fold batch+seq into the matmul M dimension

    # bf16 weights: halve weight VMEM/HBM traffic and run the MXU in its native dtype.
    w1 = params["w1"].astype(jnp.bfloat16)
    w2 = params["w2"].astype(jnp.bfloat16)

    tm = _pick_row_tile(M)
    th = _pick_hidden_chunk(d_hid)
    num_i, num_k = M // tm, d_hid // th
    grid = (num_i, num_k)               # reduction axis (d_hid chunks) last / innermost

    in_specs = [
        pl.BlockSpec((tm, d_in), lambda i, k: (i, 0)),   # x rows (resident across k)
        pl.BlockSpec((d_in, th), lambda i, k: (0, k)),   # w1 chunk (bf16)
        pl.BlockSpec((1, th),    lambda i, k: (0, k)),   # b1 chunk
        pl.BlockSpec((th, d_in), lambda i, k: (k, 0)),   # w2 chunk (bf16)
        pl.BlockSpec((1, d_in),  lambda i, k: (0, 0)),   # b2        (grid-invariant)
        pl.BlockSpec((1, d_in),  lambda i, k: (0, 0)),   # ln gamma  (grid-invariant)
        pl.BlockSpec((1, d_in),  lambda i, k: (0, 0)),   # ln beta   (grid-invariant)
    ]
    out_specs = pl.BlockSpec((tm, d_in), lambda i, k: (i, 0))
    out_shape = jax.ShapeDtypeStruct((M, d_in), x.dtype)

    # Scheduling hint: 2 matmuls + elementwise/LN; one rsqrt per row; bf16 weights,
    # re-streamed per row-tile only when the hidden dim is actually chunked.
    flops = 4 * M * d_in * d_hid + 10 * M * d_in
    weight_bytes = 2 * (2 * d_in * d_hid) * (num_i if num_k > 1 else 1)
    bytes_accessed = 4 * 2 * M * d_in + weight_bytes + 2 * d_hid + 4 * 4 * d_in

    kernel = functools.partial(ffn_kernel, eps=eps, inv_d=1.0 / d_in)
    out2d = pl.pallas_call(
        kernel,
        out_shape=out_shape,
        grid=grid,
        in_specs=in_specs,
        out_specs=out_specs,
        scratch_shapes=[pltpu.VMEM((tm, d_in), jnp.float32)],   # f32 accumulator
        input_output_aliases={0: 0},                            # reuse x2d buffer for output
        compiler_params=pltpu.CompilerParams(
            dimension_semantics=("parallel", "arbitrary"),
            vmem_limit_bytes=48 * 1024 * 1024),
        cost_estimate=pl.CostEstimate(flops=flops, transcendentals=M,
                                      bytes_accessed=bytes_accessed),
    )(x2d, w1, params["b1"], w2, params["b2"], params["gamma"], params["beta"])

    return out2d.reshape(B, L, d_in)


def reference_ffn(x, params, *, eps=1e-6):
    """Pure-JAX f32 reference matching the PyTorch forward (prenorm=False, dropout=0)."""
    h = jnp.maximum(x @ params["w1"] + params["b1"][0], 0.0)
    y = h @ params["w2"] + params["b2"][0]
    y = y + x
    mean = jnp.mean(y, axis=-1, keepdims=True)
    var = jnp.mean((y - mean) ** 2, axis=-1, keepdims=True)
    return (y - mean) * jax.lax.rsqrt(var + eps) * params["gamma"][0] + params["beta"][0]


def init_params(key, d_in, d_hid):
    """Deterministic init; weights in (in, out) layout so the kernel computes x @ W + b."""
    ks = jax.random.split(key, 4)
    s1 = 1.0 / jnp.sqrt(jnp.float32(d_in))
    s2 = 1.0 / jnp.sqrt(jnp.float32(d_hid))
    return {
        "w1": jax.random.normal(ks[0], (d_in, d_hid), jnp.float32) * s1,
        "b1": jax.random.normal(ks[1], (1, d_hid), jnp.float32) * 0.01,
        "w2": jax.random.normal(ks[2], (d_hid, d_in), jnp.float32) * s2,
        "b2": jax.random.normal(ks[3], (1, d_in), jnp.float32) * 0.01,
        "gamma": jnp.ones((1, d_in), jnp.float32),    # LayerNorm weight
        "beta": jnp.zeros((1, d_in), jnp.float32),    # LayerNorm bias
    }


if __name__ == "__main__":
    # Small shapes consistent with the module: batch=2, seq=8, d_in=32, d_hid=64.
    # (Production shapes should keep d_in / d_hid multiples of 128 for lane-dense stores.)
    B, L, d_in, d_hid = 2, 8, 32, 64

    key = jax.random.PRNGKey(0)
    kx, kp = jax.random.split(key)
    x = jax.random.normal(kx, (B, L, d_in), jnp.float32)
    params = init_params(kp, d_in, d_hid)

    out = jax.jit(positionwise_feed_forward)(x, params)
    out = jax.block_until_ready(out)

    assert out.shape == (B, L, d_in)
    assert bool(jnp.all(jnp.isfinite(out)))

    # f32 reference; tolerance loosened for the bf16 MXU operands in the kernel.
    ref = reference_ffn(x, params)
    assert bool(jnp.allclose(out, ref, atol=2e-2, rtol=2e-2)), "mismatch vs reference"

    print("KERNEL_OK")
</pallas_src>

<mosaic_0001>
module attributes {stable_mosaic.version = 11 : i64} {
  func.func @ffn_kernel(%arg0: i32, %arg1: i32, %arg2: memref<8x32xf32, #tpu.memory_space<vmem>>, %arg3: memref<32x64xbf16, #tpu.memory_space<vmem>>, %arg4: memref<1x64xf32, #tpu.memory_space<vmem>>, %arg5: memref<64x32xbf16, #tpu.memory_space<vmem>>, %arg6: memref<1x32xf32, #tpu.memory_space<vmem>>, %arg7: memref<1x32xf32, #tpu.memory_space<vmem>>, %arg8: memref<1x32xf32, #tpu.memory_space<vmem>>, %arg9: memref<8x32xf32, #tpu.memory_space<vmem>>, %arg10: memref<8x32xf32, #tpu.memory_space<vmem>>) attributes {dimension_semantics = [#tpu.dimension_semantics<parallel>, #tpu.dimension_semantics<arbitrary>], iteration_bounds = array<i64: 2, 1>, scalar_prefetch = 0 : i64, scratch_operands = 1 : i64, tpu.core_type = #tpu.core_type<tc>, window_params = [{transform_indices = @transform_0, window_bounds = array<i64: 8, 32>}, {transform_indices = @transform_1, window_bounds = array<i64: 32, 64>}, {transform_indices = @transform_2, window_bounds = array<i64: 1, 64>}, {transform_indices = @transform_3, window_bounds = array<i64: 64, 32>}, {pipeline_mode = #tpu.pipeline_mode<synchronous>, transform_indices = @transform_4, window_bounds = array<i64: 1, 32>}, {pipeline_mode = #tpu.pipeline_mode<synchronous>, transform_indices = @transform_5, window_bounds = array<i64: 1, 32>}, {pipeline_mode = #tpu.pipeline_mode<synchronous>, transform_indices = @transform_6, window_bounds = array<i64: 1, 32>}, {transform_indices = @transform_7, window_bounds = array<i64: 8, 32>}]} {
    %c0_i32 = arith.constant 0 : i32
    %0 = arith.cmpi eq, %arg1, %c0_i32 : i32
    %1 = arith.extui %0 : i1 to i32
    %c0_i32_0 = arith.constant 0 : i32
    %2 = arith.cmpi ne, %1, %c0_i32_0 : i32
    scf.if %2 {
      %cst_16 = arith.constant 0.000000e+00 : f32
      %21 = vector.broadcast %cst_16 : f32 to vector<8x32xf32>
      %c0_17 = arith.constant 0 : index
      %c0_18 = arith.constant 0 : index
      %22 = vector.load %arg10[%c0_17, %c0_18] : memref<8x32xf32, #tpu.memory_space<vmem>>, vector<8x32xf32>
      tpu.vector_store %arg10[%c0_17, %c0_18], %21 {strides = array<i32>} : memref<8x32xf32, #tpu.memory_space<vmem>>, vector<8x32xf32>,
    } else {
    }
    %c0 = arith.constant 0 : index
    %c0_1 = arith.constant 0 : index
    %3 = vector.load %arg2[%c0, %c0_1] : memref<8x32xf32, #tpu.memory_space<vmem>>, vector<8x32xf32>
    %4 = arith.truncf %3 : vector<8x32xf32> to vector<8x32xbf16>
    %c0_2 = arith.constant 0 : index
    %c0_3 = arith.constant 0 : index
    %5 = vector.load %arg3[%c0_2, %c0_3] : memref<32x64xbf16, #tpu.memory_space<vmem>>, vector<32x64xbf16>
    %cst = arith.constant dense<0.000000e+00> : vector<8x64xf32>
    %6 = tpu.matmul %4, %5, %cst {dimension_numbers = #tpu.dot_dimension_numbers<[1], [0], [0], [1], [0, 0, 1, 1], [], []>} : vector<8x32xbf16>, vector<32x64xbf16>, vector<8x64xf32> -> vector<8x64xf32>
    %c0_4 = arith.constant 0 : index
    %c0_5 = arith.constant 0 : index
    %7 = vector.load %arg4[%c0_4, %c0_5] : memref<1x64xf32, #tpu.memory_space<vmem>>, vector<1x64xf32>
    %8 = vector.broadcast %7 : vector<1x64xf32> to vector<8x64xf32>
    %9 = arith.addf %6, %8 : vector<8x64xf32>
    %cst_6 = arith.constant 0.000000e+00 : f32
    %10 = vector.broadcast %cst_6 : f32 to vector<8x64xf32>
    %11 = arith.maximumf %9, %10 : vector<8x64xf32>
    %c0_7 = arith.constant 0 : index
    %c0_8 = arith.constant 0 : index
    %12 = vector.load %arg10[%c0_7, %c0_8] : memref<8x32xf32, #tpu.memory_space<vmem>>, vector<8x32xf32>
    %13 = arith.truncf %11 : vector<8x64xf32> to vector<8x64xbf16>
    %c0_9 = arith.constant 0 : index
    %c0_10 = arith.constant 0 : index
    %14 = vector.load %arg5[%c0_9, %c0_10] : memref<64x32xbf16, #tpu.memory_space<vmem>>, vector<64x32xbf16>
    %cst_11 = arith.constant dense<0.000000e+00> : vector<8x32xf32>
    %15 = tpu.matmul %13, %14, %cst_11 {dimension_numbers = #tpu.dot_dimension_numbers<[1], [0], [0], [1], [0, 0, 1, 1], [], []>} : vector<8x64xbf16>, vector<64x32xbf16>, vector<8x32xf32> -> vector<8x32xf32>
    %16 = arith.addf %12, %15 : vector<8x32xf32>
    %c0_12 = arith.constant 0 : index
    %c0_13 = arith.constant 0 : index
    %17 = vector.load %arg10[%c0_12, %c0_13] : memref<8x32xf32, #tpu.memory_space<vmem>>, vector<8x32xf32>
    tpu.vector_store %arg10[%c0_12, %c0_13], %16 {strides = array<i32>} : memref<8x32xf32, #tpu.memory_space<vmem>>, vector<8x32xf32>,
    %c0_i32_14 = arith.constant 0 : i32
    %18 = arith.cmpi eq, %arg1, %c0_i32_14 : i32
    %19 = arith.extui %18 : i1 to i32
    %c0_i32_15 = arith.constant 0 : i32
    %20 = arith.cmpi ne, %19, %c0_i32_15 : i32
    scf.if %20 {
      %c0_16 = arith.constant 0 : index
      %c0_17 = arith.constant 0 : index
      %21 = vector.load %arg10[%c0_16, %c0_17] : memref<8x32xf32, #tpu.memory_space<vmem>>, vector<8x32xf32>
      %c0_18 = arith.constant 0 : index
      %c0_19 = arith.constant 0 : index
      %22 = vector.load %arg6[%c0_18, %c0_19] : memref<1x32xf32, #tpu.memory_space<vmem>>, vector<1x32xf32>
      %23 = vector.broadcast %22 : vector<1x32xf32> to vector<8x32xf32>
      %24 = arith.addf %21, %23 : vector<8x32xf32>
      %25 = arith.addf %24, %3 : vector<8x32xf32>
      %cst_20 = arith.constant dense<0.000000e+00> : vector<8xf32>
      %26 = vector.multi_reduction <add>, %25, %cst_20 [1] : vector<8x32xf32> to vector<8xf32>
      %27 = vector.shape_cast %26 : vector<8xf32> to vector<8x1xf32>
      %28 = arith.mulf %25, %25 : vector<8x32xf32>
      %cst_21 = arith.constant dense<0.000000e+00> : vector<8xf32>
      %29 = vector.multi_reduction <add>, %28, %cst_21 [1] : vector<8x32xf32> to vector<8xf32>
      %30 = vector.shape_cast %29 : vector<8xf32> to vector<8x1xf32>
      %cst_22 = arith.constant 3.125000e-02 : f32
      %31 = vector.broadcast %cst_22 : f32 to vector<8x1xf32>
      %32 = arith.mulf %27, %31 : vector<8x1xf32>
      %cst_23 = arith.constant 3.125000e-02 : f32
      %33 = vector.broadcast %cst_23 : f32 to vector<8x1xf32>
      %34 = arith.mulf %30, %33 : vector<8x1xf32>
      %35 = arith.mulf %32, %32 : vector<8x1xf32>
      %36 = arith.subf %34, %35 : vector<8x1xf32>
      %cst_24 = arith.constant 0.000000e+00 : f32
      %37 = vector.broadcast %cst_24 : f32 to vector<8x1xf32>
      %38 = arith.maximumf %36, %37 : vector<8x1xf32>
      %39 = vector.broadcast %32 : vector<8x1xf32> to vector<8x32xf32>
      %40 = arith.subf %25, %39 : vector<8x32xf32>
      %cst_25 = arith.constant 9.99999997E-7 : f32
      %41 = vector.broadcast %cst_25 : f32 to vector<8x1xf32>
      %42 = arith.addf %38, %41 : vector<8x1xf32>
      %43 = math.rsqrt %42 : vector<8x1xf32>
      %44 = vector.broadcast %43 : vector<8x1xf32> to vector<8x32xf32>
      %45 = arith.mulf %40, %44 : vector<8x32xf32>
      %c0_26 = arith.constant 0 : index
      %c0_27 = arith.constant 0 : index
      %46 = vector.load %arg7[%c0_26, %c0_27] : memref<1x32xf32, #tpu.memory_space<vmem>>, vector<1x32xf32>
      %47 = vector.broadcast %46 : vector<1x32xf32> to vector<8x32xf32>
      %48 = arith.mulf %45, %47 : vector<8x32xf32>
      %c0_28 = arith.constant 0 : index
      %c0_29 = arith.constant 0 : index
      %49 = vector.load %arg8[%c0_28, %c0_29] : memref<1x32xf32, #tpu.memory_space<vmem>>, vector<1x32xf32>
      %50 = vector.broadcast %49 : vector<1x32xf32> to vector<8x32xf32>
      %51 = arith.addf %48, %50 : vector<8x32xf32>
      %c0_30 = arith.constant 0 : index
      %c0_31 = arith.constant 0 : index
      %52 = vector.load %arg9[%c0_30, %c0_31] : memref<8x32xf32, #tpu.memory_space<vmem>>, vector<8x32xf32>
      tpu.vector_store %arg9[%c0_30, %c0_31], %51 {strides = array<i32>} : memref<8x32xf32, #tpu.memory_space<vmem>>, vector<8x32xf32>,
    } else {
    }
    return
  }
  func.func @transform_0(%arg0: i32, %arg1: i32) -> (i32, i32) {
    %c0_i32 = arith.constant 0 : i32
    %c0_i32_0 = arith.constant 0 : i32
    return %arg0, %c0_i32 : i32, i32
  }
  func.func @transform_1(%arg0: i32, %arg1: i32) -> (i32, i32) {
    %c0_i32 = arith.constant 0 : i32
    %c0_i32_0 = arith.constant 0 : i32
    return %c0_i32, %arg1 : i32, i32
  }
  func.func @transform_2(%arg0: i32, %arg1: i32) -> (i32, i32) {
    %c0_i32 = arith.constant 0 : i32
    %c0_i32_0 = arith.constant 0 : i32
    return %c0_i32, %arg1 : i32, i32
  }
  func.func @transform_3(%arg0: i32, %arg1: i32) -> (i32, i32) {
    %c0_i32 = arith.constant 0 : i32
    %c0_i32_0 = arith.constant 0 : i32
    return %arg1, %c0_i32 : i32, i32
  }
  func.func @transform_4(%arg0: i32, %arg1: i32) -> (i32, i32) {
    %c0_i32 = arith.constant 0 : i32
    %c0_i32_0 = arith.constant 0 : i32
    %c0_i32_1 = arith.constant 0 : i32
    return %c0_i32, %c0_i32_0 : i32, i32
  }
  func.func @transform_5(%arg0: i32, %arg1: i32) -> (i32, i32) {
    %c0_i32 = arith.constant 0 : i32
    %c0_i32_0 = arith.constant 0 : i32
    %c0_i32_1 = arith.constant 0 : i32
    return %c0_i32, %c0_i32_0 : i32, i32
  }
  func.func @transform_6(%arg0: i32, %arg1: i32) -> (i32, i32) {
    %c0_i32 = arith.constant 0 : i32
    %c0_i32_0 = arith.constant 0 : i32
    %c0_i32_1 = arith.constant 0 : i32
    return %c0_i32, %c0_i32_0 : i32, i32
  }
  func.func @transform_7(%arg0: i32, %arg1: i32) -> (i32, i32) {
    %c0_i32 = arith.constant 0 : i32
    %c0_i32_0 = arith.constant 0 : i32
    return %arg0, %c0_i32 : i32, i32
  }
}

</mosaic_0001>

<bundles_post_ra>
// kernel: positionwise_feed_forward.1
= control target key start
LH: loop header
LB: loop body
LE: loop exit
PB: predicated region body
PF: predicated region fallthrough
CT: control target
= control target key end

     0   :  { %s798_s24 = smov 0   ;;  %s800_s25 = smov 0   ;;  %s874_s0 = inlined_call_operand.vmem [shape: f32[16,32], index: 0, kind: input, shape index: {}, may-alias: {0,7}]   ;;  %s875_s1 = inlined_call_operand.vmem [shape: bf16[32,64], index: 1, kind: input, shape index: {}]   ;;  %s876_s2 = inlined_call_operand.vmem [shape: f32[1,64], index: 2, kind: input, shape index: {}]   ;;  %s877_s3 = inlined_call_operand.vmem [shape: bf16[64,32], index: 3, kind: input, shape index: {}]   ;;  %s878_s4 = inlined_call_operand.vmem [shape: f32[1,32], index: 4, kind: input, shape index: {}]   ;;  %s879_s5 = inlined_call_operand.vmem [shape: f32[1,32], index: 5, kind: input, shape index: {}]   ;;  %s880_s6 = inlined_call_operand.vmem [shape: f32[1,32], index: 6, kind: input, shape index: {}]   ;;  %s881_s7 = inlined_call_operand.vmem [shape: f32[16,32], index: 7, kind: output, shape index: {}, may-alias: {0,7}]  }
   0x1   :  { %s802_s26 = smov 0  }
   0x2 LB: > { %s29_s27 = sadd.s32 1, %s750_s25  ;;  %p653_p0 = scmp.ge.s32.totalorder %s754_s26, 1  ;;  %s754_s26 = sphi %s802_s26, %s17_s26   ;;  %s750_s25 = sphi %s800_s25, %s883_s25   ;;  %s746_s24 = sphi %s798_s24, %s882_s24  }
   0x3   : > { %p31_p1 = scmp.ge.s32.totalorder %s29_s27, 2  ;;  %p276_p2 = scmp.lt.s32.totalorder %s754_s26, 3 }
   0x5   : > { %s885_s27 = smov (%p31_p1, %s29_s27), 0  ;;  %p277_p3 = pnand %p653_p0, %p276_p2 }
   0x6   : > { %p318_p4 = scmp.lt.s32.totalorder (!%p277_p3), %s746_s24, 1 }
   0x7   : > { %280 = sbr.rel (%p277_p3) target bundleno = 599 (0x257), region = 48 }
   0xc   : > { %v724_v0 = vld [vmem:[%s875_s1 + $0x8] sm:$0xff]   ;;  %v756_v1 = vmov 0.0   ;;  %v725_v2 = vld [vmem:[%s875_s1] sm:$0xff]   ;;  %vm757_vm0 = vmmov 0   ;;  %vm344_vm1 = vcmask 261120   ;;  %v726_v3 = vld [vmem:[%s877_s3 + $0x18] sm:$0xff]  }
   0xd   : > { %678 = vmatprep.subr.bf16.mxu0 %v756_v1  ;;  %686 = vmatprep.subr.bf16.mxu1 %v756_v1  ;;  %345 = vst.msk [vmem:[#allocation2] sm:$0xff] %vm344_vm1, %v756_v1  ;;  %s887_s24 = smov (!%p318_p4, %s746_s24), 1  ;;  %v727_v4 = vld [vmem:[%s877_s3 + $0x10] sm:$0xff]   ;;  %v728_v7 = vld [vmem:[%s877_s3 + $0x8] sm:$0xff]   ;;  %v729_v8 = vld [vmem:[%s877_s3] sm:$0xff]   ;;  %vm450_vm2 = vcmask 523264  }
   0xe   : > { %679 = vmatpush3.bf16.msra.mxu0 %v724_v0  ;;  %682 = vmatprep.mubr.msk.bf16.mxu0 %vm757_vm0, %v756_v1  ;;  %s654_s13 = sshll.u32 %s887_s24, 3  ;;  %v656_v9 = vld [vmem:[%s876_s2] ss:$0 sm:$0xff] }
   0xf   : > { %680 = vmatprep.subr.bf16.mxu0 %v756_v1  ;;  %694 = vmatprep.mubr.msk.bf16.mxu1 %vm757_vm0, %v756_v1  ;;  %s321_s16 = scalar_lea.vmem %s874_s0, %s654_s13  ;;  %v665_v23 = vld [vmem:[%s878_s4] ss:$0 sm:$0xff]  ;;  %s338_s12 = scalar_lea.vmem %s881_s7, %s654_s13 }
  0x10   : > { %687 = vmatpush3.bf16.msra.mxu1 %v726_v3  ;;  %v346_v5 = vld [vmem:[%s321_s16] sm:$0xff] }
  0x11   : > { %688 = vmatprep.subr.bf16.mxu1 %v756_v1  ;;  %v347_v6 = vpack.c.bf16 %v346_v5, %v346_v5  ;;  %v666_v40 = vld [vmem:[%s879_s5] ss:$0 sm:$0xff] }
  0x12   : > { %681 = vmatpush3.bf16.msra.mxu0 %v725_v2  ;;  %v667_v42 = vld [vmem:[%s880_s6] ss:$0 sm:$0xff] }
  0x14   : > { %689 = vmatpush3.bf16.msra.mxu1 %v727_v4  ;;  %v416_v17 = vld [vmem:[#allocation2] sm:$0xff] }
  0x15   : > { %690 = vmatprep.subr.bf16.mxu1 %v756_v1  ;;  %683 = vmatmul.mubr.msk.bf16.vlgmr.msra.gmra.mxu0 %vm344_vm1, %v347_v6 }
  0x18   : > { %691 = vmatpush3.bf16.msra.mxu1 %v728_v7 }
  0x19   : > { %692 = vmatprep.subr.bf16.mxu1 %v756_v1 }
  0x1c   : > { %693 = vmatpush3.bf16.msra.mxu1 %v729_v8 }
  0xd5   : > { %v409_v10 = vpop.f32.mrf.mxu0 }
  0xd6   : > { %v410_v11 = vadd.f32 %v656_v9, %v409_v10 }
  0xd7   : > { %v684_v12 = vpop.f32.mrf.mxu0 }
  0xd8   : > { %v415_v13 = vmax.f32 %v410_v11, 0.0 }
  0xd9   : > { %v412_v14 = vpop.f32.mrf.mxu0 }
  0xda   : > { %v417_v15 = vpack.c.bf16 %v415_v13, %v415_v13 }
  0xdb   : > { %v685_v16 = vpop.f32.mrf.mxu0 }
  0xdc   : > { %695 = vmatmul.mubr.msk.bf16.vlgmr.msra.gmra.mxu1 %vm450_vm2, %v417_v15 }
 0x19c   : > { %v488_v18 = vpop.f32.mrf.mxu1 }
 0x19d   : > { %v494_v19 = vadd.f32 %v488_v18, %v416_v17 }
 0x19e   : > { %v696_v20 = vpop.f32.mrf.mxu1 }
 0x19f   : > { %495 = vst.msk [vmem:[#allocation2] sm:$0xff] %vm344_vm1, %v494_v19 }
 0x1a0   : > { %v491_v21 = vpop.f32.mrf.mxu1 }
 0x1a2   : > { %v697_v22 = vpop.f32.mrf.mxu1 }
 0x1a6   : > { %v499_v24 = vld [vmem:[#allocation2] sm:$0xff] }
 0x1a7   : > { %v507_v25 = vadd.f32 %v665_v23, %v499_v24 }
 0x1a9   : > { %v508_v26 = vadd.f32 %v507_v25, %v346_v5 }
 0x1ab   : > { %v509_v27 = vsel %vm344_vm1, %v508_v26, 0.0  ;;  %v512_v28 = vmul.f32 %v508_v26, %v508_v26 }
 0x1ac   : > { %510 = vadd.xlane.f32.xlu0 %v509_v27 }
 0x1ad   : > { %v513_v29 = vsel %vm344_vm1, %v512_v28, 0.0 }
 0x1b0   : > { %514 = vadd.xlane.f32.xlu0 %v513_v29 }
 0x235   : > { %v511_v30 = vpop.xlane.xlu0 %510 }
 0x236   : > { %v516_v31 = vmul.f32 0.03125, %v511_v30 }
 0x238   : > { %v518_v33 = vmul.f32 %v516_v31, %v516_v31  ;;  %v521_v38 = vsub.f32 %v508_v26, %v516_v31 }
 0x239   : > { %v515_v32 = vpop.xlane.xlu0 %514 }
 0x23a   : > { %v517_v34 = vmul.f32 0.03125, %v515_v32 }
 0x23c   : > { %v519_v35 = vsub.f32 %v517_v34, %v518_v33 }
 0x23e   : > { %v520_v36 = vmax.f32 %v519_v35, 0.0 }
 0x240   : > { %v522_v37 = vadd.f32 1e-06, %v520_v36 }
 0x242   : > { %730 = vrsqrt.f32 %v522_v37 }
 0x24f   : > { %v731_v39 = vpop.eup %730 }
 0x250   : > { %v524_v41 = vmul.f32 %v731_v39, %v521_v38 }
 0x252   : > { %v532_v43 = vmul.f32 %v666_v40, %v524_v41 }
 0x254   : > { %v540_v44 = vadd.f32 %v667_v42, %v532_v43 }
 0x256   : > { %541 = vst.msk [vmem:[%s338_s12] sm:$0xff] %vm344_vm1, %v540_v44 }
 0x257 PF: > { %s17_s26 = sadd.s32 1, %s754_s26   ;;  %s882_s24 = smov %s750_s25 }
 0x258   : > { %p14_p5 = scmp.ge.s32.totalorder %s17_s26, 4   ;;  %s883_s25 = smov %s885_s27 }
 0x25a   :  { %16 = sbr.rel (!%p14_p5) target bundleno = 2 (0x2), region = 95 }

</bundles_post_ra>
